<compile_context>
chip_gen: v5e
topology: v5e:2x2
jax: 0.10.0
libtpu: 0.0.40
codegen_flags: <defaults>
</compile_context>

<pallas_src>
import jax
import jax.numpy as jnp
import numpy as np
from jax.experimental import pallas as pl
from jax.experimental.pallas import tpu as pltpu

_VMEM_LIMIT = 32 * 1024 * 1024  # v7x-safe; real block footprints are << this.


# ---------------------------------------------------------------------------
# In-kernel helpers
# ---------------------------------------------------------------------------
def _layernorm(x, gamma, beta, eps=1e-5):
    # LayerNorm over last axis, population variance (matches torch.nn.LayerNorm)
    mean = jnp.mean(x, axis=-1, keepdims=True)
    var = jnp.mean((x - mean) ** 2, axis=-1, keepdims=True)
    return (x - mean) * jax.lax.rsqrt(var + eps) * gamma + beta


def _pick_tile(dim, *, max_tile, budget_bytes, bytes_per_col):
    """Largest multiple of 128 dividing `dim`, <= max_tile and the VMEM budget.

    `dim` must already be a multiple of 128 (caller pads), so this never
    silently degrades to an un-tiled, un-pipelined full block.
    """
    cap = max(128, min(max_tile,
                       (budget_bytes // max(bytes_per_col, 1)) // 128 * 128))
    t = (min(cap, dim) // 128) * 128
    while t >= 128:
        if dim % t == 0:
            return t
        t -= 128
    return 128


def _pick_batch_block(n, target=16):
    """Largest divisor of n <= target, preferring sublane-aligned (x8) blocks
    or the full batch (so 2-D output blocks satisfy the (8,128) rule)."""
    best = 1
    for b in range(1, min(n, target) + 1):
        if n % b == 0 and (b % 8 == 0 or b == n):
            best = b
    if best == 1:
        for b in range(1, min(n, target) + 1):
            if n % b == 0:
                best = b
    return best


# ---------------------------------------------------------------------------
# Kernel A: dynamic_layer — params = pro @ Wd + bd, tiled over 2*C*D (f32 out).
# ---------------------------------------------------------------------------
def _dynamic_layer_kernel(pro_ref, wd_ref, bd_ref, out_ref):
    acc = jnp.dot(pro_ref[...], wd_ref[...],
                  preferred_element_type=jnp.float32)
    out_ref[...] = acc + bd_ref[...]          # keep params in f32 (no re-round)


# ---------------------------------------------------------------------------
# Fused Kernel B+C: per sample-block
#   h  = relu(LN1(roi @ p1))          [bn, HW, D]   (batched MXU)
#   h2 = relu(LN2(h   @ p2))          [bn, HW, C]   (batched MXU)
#   out = relu(LN3(sum_hw h2[:,hw,:] @ wo[hw] + bo))   [bn, C]
# The [bn, HW, C] intermediate never leaves VMEM/vregs; wo is VMEM-resident.
# ---------------------------------------------------------------------------
def _fused_interact_out_kernel(roi_ref, p1_ref, p2_ref, wo3_ref,
                               g1_ref, b1_ref, g2_ref, b2_ref,
                               g3_ref, b3_ref, bo_ref, out_ref):
    bn, HW, _ = roi_ref.shape
    C2 = out_ref.shape[1]

    roi = roi_ref[...]                               # [bn, HW, C] bf16
    p1 = p1_ref[...].astype(jnp.bfloat16)            # [bn, C, D]  (cast at dot)
    p2 = p2_ref[...].astype(jnp.bfloat16)            # [bn, D, C]

    # Stage 1: batched bmm + LN1 + relu (one MXU sequence for the whole block).
    h = jnp.einsum("bqc,bcd->bqd", roi, p1,
                   preferred_element_type=jnp.float32)          # [bn, HW, D] f32
    h = jnp.maximum(_layernorm(h, g1_ref[...], b1_ref[...]), 0.0)

    # Stage 2: batched bmm + LN2 + relu.
    h2 = jnp.einsum("bqd,bdc->bqc", h.astype(jnp.bfloat16), p2,
                    preferred_element_type=jnp.float32)         # [bn, HW, C] f32
    h2 = jnp.maximum(_layernorm(h2, g2_ref[...], b2_ref[...]), 0.0)
    h2 = h2.astype(jnp.bfloat16)

    # Stage 3: out_layer against VMEM-resident wo, accumulated in f32.
    # Static unroll over HW: each iter is one full-K [bn,C]x[C,C2] MXU dot
    # (equivalent to the flat [bn, HW*C] @ wo matmul, without an in-kernel
    # lane-merging reshape).
    acc = jnp.zeros((bn, C2), jnp.float32)
    for hw in range(HW):
        acc = acc + jnp.dot(h2[:, hw, :], wo3_ref[hw],
                            preferred_element_type=jnp.float32)

    y = acc + bo_ref[...]
    out_ref[...] = jnp.maximum(
        _layernorm(y, g3_ref[...], b3_ref[...]), 0.0).astype(out_ref.dtype)


# ---------------------------------------------------------------------------
# Wrapper: full DynamicConv forward
# ---------------------------------------------------------------------------
def dynamic_conv_forward(pro_feats, roi_feats, p):
    """pro_feats: [N, C], roi_feats: [N, C, H, W] -> [N, C] (f32)."""
    N, C = pro_feats.shape
    _, _, H, W = roi_feats.shape
    HW = H * W
    D = p["ln1_g"].shape[0]
    CD = C * D
    out_dim = 2 * CD

    # bf16 MXU operands; f32 accumulation, params & all LayerNorm math.
    pro_bf = pro_feats.astype(jnp.bfloat16)
    wd_bf = p["wd"].astype(jnp.bfloat16)                       # [C, 2*C*D]
    bd = p["bd"].reshape(1, out_dim).astype(jnp.float32)

    # Lane-align the tiled output dim (hardens tiling; no silent full-block).
    out_dim_p = ((out_dim + 127) // 128) * 128
    if out_dim_p != out_dim:
        wd_bf = jnp.pad(wd_bf, ((0, 0), (0, out_dim_p - out_dim)))
        bd = jnp.pad(bd, ((0, 0), (0, out_dim_p - out_dim)))

    # ---- Kernel A: dynamic_layer linear, tiled over the 2*C*D output dim ----
    # Per output column (double-buffered): wd bf16 + bd f32 + params f32.
    col_bytes = 2 * (2 * C + 4 + 4 * N)
    tn = _pick_tile(out_dim_p, max_tile=8192,
                    budget_bytes=16 * 1024 * 1024, bytes_per_col=col_bytes)
    params = pl.pallas_call(
        _dynamic_layer_kernel,
        grid=(out_dim_p // tn,),
        out_shape=jax.ShapeDtypeStruct((N, out_dim_p), jnp.float32),
        in_specs=[
            pl.BlockSpec((N, C), lambda j: (0, 0)),            # pro resident
            pl.BlockSpec((C, tn), lambda j: (0, j)),           # wd streams
            pl.BlockSpec((1, tn), lambda j: (0, j)),
        ],
        out_specs=pl.BlockSpec((N, tn), lambda j: (0, j)),
        compiler_params=pltpu.CompilerParams(
            dimension_semantics=("parallel",),
            vmem_limit_bytes=_VMEM_LIMIT),
    )(pro_bf, wd_bf, bd)
    if out_dim_p != out_dim:
        params = params[:, :out_dim]

    # glue (XLA): split dynamic params; stays f32 until the in-kernel dots.
    # TODO(synk): fold this split into the fused kernel (full A->B fusion with
    # a VMEM-resident wd) to drop the remaining HBM pass over params.
    params1 = params[:, :CD].reshape(N, C, D)
    params2 = params[:, CD:].reshape(N, D, C)

    # glue (XLA): put C (the big axis) on lanes for the kernel's roi blocks.
    roi = roi_feats.reshape(N, C, HW).transpose(0, 2, 1).astype(jnp.bfloat16)

    wo3 = p["wo"].reshape(HW, C, C).astype(jnp.bfloat16)       # VMEM-resident
    bo = p["bo"].reshape(1, C).astype(jnp.float32)
    g1 = p["ln1_g"].reshape(1, D).astype(jnp.float32)
    b1 = p["ln1_b"].reshape(1, D).astype(jnp.float32)
    g2 = p["ln2_g"].reshape(1, C).astype(jnp.float32)
    b2 = p["ln2_b"].reshape(1, C).astype(jnp.float32)
    g3 = p["ln3_g"].reshape(1, C).astype(jnp.float32)
    b3 = p["ln3_b"].reshape(1, C).astype(jnp.float32)

    # ---- Fused Kernel B+C: grid over sample blocks (parallel => 2 TCs on v7x)
    bn = _pick_batch_block(N, 16)
    out = pl.pallas_call(
        _fused_interact_out_kernel,
        grid=(N // bn,),
        out_shape=jax.ShapeDtypeStruct((N, C), jnp.float32),
        in_specs=[
            pl.BlockSpec((bn, HW, C), lambda n: (n, 0, 0)),    # roi (bf16)
            pl.BlockSpec((bn, C, D), lambda n: (n, 0, 0)),     # params1 (f32)
            pl.BlockSpec((bn, D, C), lambda n: (n, 0, 0)),     # params2 (f32)
            pl.BlockSpec((HW, C, C), lambda n: (0, 0, 0)),     # wo, resident
            pl.BlockSpec((1, D), lambda n: (0, 0)),            # ln1 gamma
            pl.BlockSpec((1, D), lambda n: (0, 0)),            # ln1 beta
            pl.BlockSpec((1, C), lambda n: (0, 0)),            # ln2 gamma
            pl.BlockSpec((1, C), lambda n: (0, 0)),            # ln2 beta
            pl.BlockSpec((1, C), lambda n: (0, 0)),            # ln3 gamma
            pl.BlockSpec((1, C), lambda n: (0, 0)),            # ln3 beta
            pl.BlockSpec((1, C), lambda n: (0, 0)),            # bo
        ],
        out_specs=pl.BlockSpec((bn, C), lambda n: (n, 0)),
        compiler_params=pltpu.CompilerParams(
            dimension_semantics=("parallel",),
            vmem_limit_bytes=_VMEM_LIMIT),
    )(roi, params1, params2, wo3, g1, b1, g2, b2, g3, b3, bo)
    return out


# ---------------------------------------------------------------------------
# Pure-JAX f32 reference (mirrors the PyTorch forward exactly)
# ---------------------------------------------------------------------------
def reference_forward(pro, roi, p):
    N, C = pro.shape
    H, W = roi.shape[2], roi.shape[3]
    HW = H * W
    D = p["ln1_g"].shape[0]

    def ln(x, g, b, eps=1e-5):
        m = x.mean(-1, keepdims=True)
        v = ((x - m) ** 2).mean(-1, keepdims=True)
        return (x - m) / jnp.sqrt(v + eps) * g + b

    params = pro @ p["wd"] + p["bd"]
    p1 = params[:, : C * D].reshape(N, C, D)
    p2 = params[:, C * D:].reshape(N, D, C)
    x = roi.reshape(N, C, HW).transpose(0, 2, 1)
    h = jax.nn.relu(ln(jnp.einsum("nqc,ncd->nqd", x, p1), p["ln1_g"], p["ln1_b"]))
    h = jax.nn.relu(ln(jnp.einsum("nqd,ndc->nqc", h, p2), p["ln2_g"], p["ln2_b"]))
    h = h.reshape(N, HW * C)
    return jax.nn.relu(ln(h @ p["wo"] + p["bo"], p["ln3_g"], p["ln3_b"]))


if __name__ == "__main__":
    # Small shapes consistent with the module: roi_dim=C, roi_h/w, dyn_dim=D.
    N, C, H, W, D = 8, 32, 4, 4, 16

    key = jax.random.PRNGKey(0)
    ks = jax.random.split(key, 12)
    p = {
        # dynamic_layer: Linear(C, 2*C*D) -> stored as [in, out]
        "wd": jax.random.normal(ks[0], (C, 2 * C * D), jnp.float32) / np.sqrt(C),
        "bd": 0.01 * jax.random.normal(ks[1], (2 * C * D,), jnp.float32),
        # norm1: LayerNorm(D)
        "ln1_g": 1.0 + 0.1 * jax.random.normal(ks[2], (D,), jnp.float32),
        "ln1_b": 0.1 * jax.random.normal(ks[3], (D,), jnp.float32),
        # norm2: LayerNorm(C)
        "ln2_g": 1.0 + 0.1 * jax.random.normal(ks[4], (C,), jnp.float32),
        "ln2_b": 0.1 * jax.random.normal(ks[5], (C,), jnp.float32),
        # norm3: LayerNorm(C)
        "ln3_g": 1.0 + 0.1 * jax.random.normal(ks[6], (C,), jnp.float32),
        "ln3_b": 0.1 * jax.random.normal(ks[7], (C,), jnp.float32),
        # out_layer: Linear(C*H*W, C) -> stored as [in, out]
        "wo": jax.random.normal(ks[8], (C * H * W, C), jnp.float32)
        / np.sqrt(C * H * W),
        "bo": 0.01 * jax.random.normal(ks[9], (C,), jnp.float32),
    }

    pro_feats = jax.random.normal(ks[10], (N, C), jnp.float32)
    roi_feats = jax.random.normal(ks[11], (N, C, H, W), jnp.float32)

    out = dynamic_conv_forward(pro_feats, roi_feats, p)
    out = jax.block_until_ready(out)

    ref = reference_forward(pro_feats, roi_feats, p)
    # Relaxed tolerance: matmul operands are deliberately bf16 at the dots
    # (f32 accumulation, f32 params and f32 LayerNorms), reference is pure f32.
    np.testing.assert_allclose(np.asarray(out), np.asarray(ref),
                               rtol=5e-2, atol=5e-2)
    print("KERNEL_OK")
</pallas_src>

<mosaic_0001>
module attributes {stable_mosaic.version = 11 : i64} {
  func.func @_dynamic_layer_kernel(%arg0: i32, %arg1: memref<8x32xbf16, #tpu.memory_space<vmem>>, %arg2: memref<32x1024xbf16, #tpu.memory_space<vmem>>, %arg3: memref<1x1024xf32, #tpu.memory_space<vmem>>, %arg4: memref<8x1024xf32, #tpu.memory_space<vmem>>) attributes {dimension_semantics = [#tpu.dimension_semantics<parallel>], iteration_bounds = array<i64: 1>, scalar_prefetch = 0 : i64, scratch_operands = 0 : i64, tpu.core_type = #tpu.core_type<tc>, window_params = [{pipeline_mode = #tpu.pipeline_mode<synchronous>, transform_indices = @transform_0, window_bounds = array<i64: 8, 32>}, {transform_indices = @transform_1, window_bounds = array<i64: 32, 1024>}, {transform_indices = @transform_2, window_bounds = array<i64: 1, 1024>}, {transform_indices = @transform_3, window_bounds = array<i64: 8, 1024>}]} {
    %c0 = arith.constant 0 : index
    %c0_0 = arith.constant 0 : index
    %0 = vector.load %arg1[%c0, %c0_0] : memref<8x32xbf16, #tpu.memory_space<vmem>>, vector<8x32xbf16>
    %c0_1 = arith.constant 0 : index
    %c0_2 = arith.constant 0 : index
    %1 = vector.load %arg2[%c0_1, %c0_2] : memref<32x1024xbf16, #tpu.memory_space<vmem>>, vector<32x1024xbf16>
    %cst = arith.constant dense<0.000000e+00> : vector<8x1024xf32>
    %2 = tpu.matmul %0, %1, %cst {dimension_numbers = #tpu.dot_dimension_numbers<[1], [0], [0], [1], [0, 0, 1, 1], [], []>} : vector<8x32xbf16>, vector<32x1024xbf16>, vector<8x1024xf32> -> vector<8x1024xf32>
    %c0_3 = arith.constant 0 : index
    %c0_4 = arith.constant 0 : index
    %3 = vector.load %arg3[%c0_3, %c0_4] : memref<1x1024xf32, #tpu.memory_space<vmem>>, vector<1x1024xf32>
    %4 = vector.broadcast %3 : vector<1x1024xf32> to vector<8x1024xf32>
    %5 = arith.addf %2, %4 : vector<8x1024xf32>
    %c0_5 = arith.constant 0 : index
    %c0_6 = arith.constant 0 : index
    %6 = vector.load %arg4[%c0_5, %c0_6] : memref<8x1024xf32, #tpu.memory_space<vmem>>, vector<8x1024xf32>
    tpu.vector_store %arg4[%c0_5, %c0_6], %5 {strides = array<i32>} : memref<8x1024xf32, #tpu.memory_space<vmem>>, vector<8x1024xf32>,
    return
  }
  func.func @transform_0(%arg0: i32) -> (i32, i32) {
    %c0_i32 = arith.constant 0 : i32
    %c0_i32_0 = arith.constant 0 : i32
    %c0_i32_1 = arith.constant 0 : i32
    return %c0_i32, %c0_i32_0 : i32, i32
  }
  func.func @transform_1(%arg0: i32) -> (i32, i32) {
    %c0_i32 = arith.constant 0 : i32
    %c0_i32_0 = arith.constant 0 : i32
    return %c0_i32, %arg0 : i32, i32
  }
  func.func @transform_2(%arg0: i32) -> (i32, i32) {
    %c0_i32 = arith.constant 0 : i32
    %c0_i32_0 = arith.constant 0 : i32
    return %c0_i32, %arg0 : i32, i32
  }
  func.func @transform_3(%arg0: i32) -> (i32, i32) {
    %c0_i32 = arith.constant 0 : i32
    %c0_i32_0 = arith.constant 0 : i32
    return %c0_i32, %arg0 : i32, i32
  }
}

</mosaic_0001>

<bundles_post_ra>
// kernel: tpu_custom_call.1
= control target key start
LH: loop header
LB: loop body
LE: loop exit
PB: predicated region body
PF: predicated region fallthrough
CT: control target
= control target key end

     0   :  { %8 = vsyncpa [#allocation3], 0  ;;  %s550_s0 = inlined_call_operand.hbm [shape: bf16[8,32], index: 0, kind: input, shape index: {}]   ;;  %s551_s1 = inlined_call_operand.hbm [shape: bf16[32,1024], index: 1, kind: input, shape index: {}]   ;;  %s552_s2 = inlined_call_operand.hbm [shape: f32[1,1024], index: 2, kind: input, shape index: {}]   ;;  %s553_s3 = inlined_call_operand.hbm [shape: f32[8,1024], index: 3, kind: output, shape index: {}]  }
   0x1   :  { %9 = vsyncpa [#allocation6], 0  ;;  %s26_s14 = sshll.u32 %s551_s1, 4  ;;  %s27_s14 = int_to_ptr.hbm [resolvable:$true] %s26_s14 }
   0x2   :  { %10 = vsyncpa [#allocation4], 0  ;;  %s504_s15 = smov [#allocation5]   ;;  %s16_s19 = sshll.u32 %s550_s0, 4  ;;  %s17_s19 = int_to_ptr.hbm [resolvable:$true] %s16_s19 }
   0x3   :  { %s28_s16 = sshll.u32 %s504_s15, 4  ;;  %s505_s20 = smov 512   ;;  %s29_s16 = int_to_ptr.vmem [resolvable:$true] %s28_s16 }
   0x4   :  { %s506_s21 = smov 32   ;;  %s507_s22 = smov [#allocation2]  }
   0x5   :  { %34 = dma.hbm_to_vmem [thread:$0]  %s27_s14, 2048, %s29_s16, [#allocation6], %s505_s20, %s505_s20, %s506_s21  }
   0x6   :  { %s18_s23 = sshll.u32 %s507_s22, 4  ;;  %s40_s26 = sshll.u32 %s552_s2, 4  ;;  %s19_s23 = int_to_ptr.vmem [resolvable:$true] %s18_s23  ;;  %s41_s26 = int_to_ptr.hbm [resolvable:$true] %s40_s26 }
   0x7   :  { %21 = dma.hbm_to_vmem [thread:$0]  %s17_s19, 64, %s19_s23, [#allocation3]  }
   0x8   :  { %s508_s1 = smov [#allocation7]  }
   0x9   :  { %s42_s27 = sshll.u32 %s508_s1, 4  ;;  %s43_s27 = int_to_ptr.vmem [resolvable:$true] %s42_s27 }
   0xa   :  { %45 = dma.hbm_to_vmem [thread:$0]  %s41_s26, 128, %s43_s27, [#allocation6]  }
   0xb   :  { %498 = dma.done.wait [#allocation3], 64  }
   0xc   :  { %499 = vsyncadd [#allocation3], 4294967232 }
   0xd   :  { %500 = dma.done.wait [#allocation6], 2176  }
   0xe   :  { %501 = vsyncadd [#allocation6], 4294965120  ;;  %vm174_vm0 = vcmask 261120   ;;  %v342_v0 = vld [vmem:[#allocation5 + $0x40] sm:$0xf]  ;;  %s509_s0 = smov [#allocation8]  }
   0xf   :  { %v392_v1 = vld [vmem:[#allocation5 + $0x5c] sm:$0xf0]  ;;  %v388_v2 = vld [vmem:[#allocation5 + $0x44] sm:$0xf]  ;;  %v350_v5 = vld [vmem:[#allocation5 + $0x48] sm:$0xf] }
  0x10   :  { %v343_v3 = vor.u32 %v392_v1, %v342_v0  ;;  %v344_v4 = vld [vmem:[#allocation5 + $0x60] sm:$0xf0]  ;;  %v393_v6 = vld [vmem:[#allocation5 + $0x64] sm:$0xf0]  ;;  %v389_v9 = vld [vmem:[#allocation5 + $0x4c] sm:$0xf] }
  0x11   :  { %v347_v7 = vor.u32 %v388_v2, %v344_v4  ;;  %v351_v8 = vor.u32 %v393_v6, %v350_v5  ;;  %v352_v10 = vld [vmem:[#allocation5 + $0x68] sm:$0xf0]  ;;  %v310_v11 = vld [vmem:[#allocation5] sm:$0xf]  ;;  %v380_v14 = vld [vmem:[#allocation5 + $0x4] sm:$0xf] }
  0x12   :  { %184 = vmatpush.bf16.msra.mxu0 %v343_v3  ;;  %v355_v12 = vor.u32 %v389_v9, %v352_v10  ;;  %v384_v13 = vld [vmem:[#allocation5 + $0x1c] sm:$0xf0]  ;;  %v312_v15 = vld [vmem:[#allocation5 + $0x20] sm:$0xf0]  ;;  %v318_v18 = vld [vmem:[#allocation5 + $0x8] sm:$0xf] }
  0x13   :  { %197 = vmatpush.bf16.msra.mxu1 %v347_v7  ;;  %210 = vmatpush.bf16.msra.mxu2 %v351_v8  ;;  %v311_v16 = vor.u32 %v384_v13, %v310_v11  ;;  %v315_v17 = vor.u32 %v380_v14, %v312_v15  ;;  %v385_v19 = vld [vmem:[#allocation5 + $0x24] sm:$0xf0]  ;;  %v381_v20 = vld [vmem:[#allocation5 + $0xc] sm:$0xf]  ;;  %v59_v23 = vld [vmem:[#allocation2] sm:$0xf] }
  0x14   :  { %223 = vmatpush.bf16.msra.mxu3 %v355_v12  ;;  %v319_v21 = vor.u32 %v385_v19, %v318_v18  ;;  %v320_v22 = vld [vmem:[#allocation5 + $0x28] sm:$0xf0]  ;;  %v366_v24 = vld [vmem:[#allocation5 + $0x58] sm:$0xf]  ;;  %v391_v27 = vld [vmem:[#allocation5 + $0x5c] sm:$0xf] }
  0x15   :  { %v323_v25 = vor.u32 %v381_v20, %v320_v22  ;;  %v395_v26 = vld [vmem:[#allocation5 + $0x74] sm:$0xf0]  ;;  %v368_v28 = vld [vmem:[#allocation5 + $0x78] sm:$0xf0]  ;;  %v358_v31 = vld [vmem:[#allocation5 + $0x50] sm:$0xf] }
  0x16   :  { %185 = vmatpush.bf16.msra.mxu0 %v311_v16  ;;  %v367_v29 = vor.u32 %v395_v26, %v366_v24  ;;  %v371_v30 = vor.u32 %v391_v27, %v368_v28  ;;  %v394_v32 = vld [vmem:[#allocation5 + $0x6c] sm:$0xf0]  ;;  %v390_v33 = vld [vmem:[#allocation5 + $0x54] sm:$0xf]  ;;  %v334_v36 = vld [vmem:[#allocation5 + $0x18] sm:$0xf] }
  0x17   :  { %198 = vmatpush.bf16.msra.mxu1 %v315_v17  ;;  %211 = vmatpush.bf16.msra.mxu2 %v319_v21  ;;  %v359_v34 = vor.u32 %v394_v32, %v358_v31  ;;  %v360_v35 = vld [vmem:[#allocation5 + $0x70] sm:$0xf0]  ;;  %v387_v37 = vld [vmem:[#allocation5 + $0x34] sm:$0xf0]  ;;  %v383_v40 = vld [vmem:[#allocation5 + $0x1c] sm:$0xf] }
  0x18   :  { %224 = vmatpush.bf16.msra.mxu3 %v323_v25  ;;  %v363_v38 = vor.u32 %v390_v33, %v360_v35  ;;  %v335_v39 = vor.u32 %v387_v37, %v334_v36  ;;  %v336_v41 = vld [vmem:[#allocation5 + $0x38] sm:$0xf0]  ;;  %v326_v42 = vld [vmem:[#allocation5 + $0x10] sm:$0xf]  ;;  %v382_v45 = vld [vmem:[#allocation5 + $0x14] sm:$0xf] }
  0x19   :  { %372 = vmatmul.msk.bf16.vlgmr.msra.gmra.mxu0 %vm174_vm0, %v59_v23  ;;  %v339_v43 = vor.u32 %v383_v40, %v336_v41  ;;  %v386_v44 = vld [vmem:[#allocation5 + $0x2c] sm:$0xf0]  ;;  %v328_v46 = vld [vmem:[#allocation5 + $0x30] sm:$0xf0]  ;;  %v76_v49 = vld [vmem:[#allocation7] sm:$0xff]  ;;  %s295_s2 = sshll.u32 %s509_s0, 4  ;;  %s296_s2 = int_to_ptr.vmem [resolvable:$true] %s295_s2 }
  0x1a   :  { %373 = vmatmul.msk.bf16.vlgmr.msra.gmra.mxu1 %vm174_vm0, %v59_v23  ;;  %374 = vmatmul.msk.bf16.vlgmr.msra.gmra.mxu2 %vm174_vm0, %v59_v23  ;;  %v327_v47 = vor.u32 %v386_v44, %v326_v42  ;;  %v331_v48 = vor.u32 %v382_v45, %v328_v46  ;;  %v78_v50 = vperm.slane %v76_v49, 0  ;;  %v79_v51 = vperm.slane %v76_v49, 1  ;;  %s297_s30 = sshll.u32 %s553_s3, 4  ;;  %s298_s30 = int_to_ptr.hbm [resolvable:$true] %s297_s30 }
  0x1b   :  { %262 = vmatpush.bf16.msrb.mxu2 %v367_v29  ;;  %375 = vmatmul.msk.bf16.vlgmr.msra.gmra.mxu3 %vm174_vm0, %v59_v23  ;;  %v80_v56 = vperm.slane %v76_v49, 2  ;;  %v81_v57 = vperm.slane %v76_v49, 3  ;;  %v82_v0 = vperm.slane %v76_v49, 4  ;;  %v83_v1 = vperm.slane %v76_v49, 5 }
  0x1c   :  { %275 = vmatpush.bf16.msrb.mxu3 %v371_v30  ;;  %236 = vmatpush.bf16.msrb.mxu0 %v359_v34  ;;  %v84_v8 = vperm.slane %v76_v49, 6  ;;  %v85_v9 = vperm.slane %v76_v49, 7 }
  0x1d   :  { %249 = vmatpush.bf16.msrb.mxu1 %v363_v38 }
  0x1f   :  { %263 = vmatpush.bf16.msrb.mxu2 %v335_v39 }
  0x20   :  { %276 = vmatpush.bf16.msrb.mxu3 %v339_v43  ;;  %237 = vmatpush.bf16.msrb.mxu0 %v327_v47 }
  0x21   :  { %250 = vmatpush.bf16.msrb.mxu1 %v331_v48 }
  0x29   :  { %376 = vmatmul.msk.bf16.vlgmr.msrb.gmra.mxu0 %vm174_vm0, %v59_v23 }
  0x2a   :  { %377 = vmatmul.msk.bf16.vlgmr.msrb.gmra.mxu1 %vm174_vm0, %v59_v23  ;;  %378 = vmatmul.msk.bf16.vlgmr.msrb.gmra.mxu2 %vm174_vm0, %v59_v23 }
  0x2b   :  { %379 = vmatmul.msk.bf16.vlgmr.msrb.gmra.mxu3 %vm174_vm0, %v59_v23 }
  0x96   :  { %v187_v52 = vpop.f32.mrf.mxu0 }
  0x97   :  { %v188_v53 = vadd.f32 %v187_v52, %v78_v50  ;;  %v200_v54 = vpop.f32.mrf.mxu1 }
  0x98   :  { %v201_v55 = vadd.f32 %v200_v54, %v79_v51 }
  0x99   :  { %282 = vst [vmem:[#allocation8] sm:$0xff] %v188_v53 }
  0x9a   :  { %283 = vst [vmem:[#allocation8 + $0x8] sm:$0xff] %v201_v55 }
  0x9d   :  { %v213_v58 = vpop.f32.mrf.mxu2 }
  0x9e   :  { %v214_v59 = vadd.f32 %v213_v58, %v80_v56  ;;  %v226_v60 = vpop.f32.mrf.mxu3  ;;  %v189_v61 = vpop.f32.mrf.mxu0 }
  0x9f   :  { %v227_v62 = vadd.f32 %v226_v60, %v81_v57  ;;  %v202_v63 = vpop.f32.mrf.mxu1 }
  0xa0   :  { %284 = vst [vmem:[#allocation8 + $0x10] sm:$0xff] %v214_v59 }
  0xa1   :  { %285 = vst [vmem:[#allocation8 + $0x18] sm:$0xff] %v227_v62 }
  0xa5   :  { %v215_v2 = vpop.f32.mrf.mxu2 }
  0xa6   :  { %v228_v3 = vpop.f32.mrf.mxu3  ;;  %v239_v4 = vpop.f32.mrf.mxu0 }
  0xa7   :  { %v240_v5 = vadd.f32 %v239_v4, %v82_v0  ;;  %v252_v6 = vpop.f32.mrf.mxu1 }
  0xa8   :  { %v253_v7 = vadd.f32 %v252_v6, %v83_v1 }
  0xa9   :  { %286 = vst [vmem:[#allocation8 + $0x20] sm:$0xff] %v240_v5 }
  0xaa   :  { %287 = vst [vmem:[#allocation8 + $0x28] sm:$0xff] %v253_v7 }
  0xad   :  { %v265_v10 = vpop.f32.mrf.mxu2 }
  0xae   :  { %v266_v11 = vadd.f32 %v265_v10, %v84_v8  ;;  %v278_v12 = vpop.f32.mrf.mxu3  ;;  %v241_v13 = vpop.f32.mrf.mxu0 }
  0xaf   :  { %v279_v14 = vadd.f32 %v278_v12, %v85_v9  ;;  %v254_v15 = vpop.f32.mrf.mxu1 }
  0xb0   :  { %288 = vst [vmem:[#allocation8 + $0x30] sm:$0xff] %v266_v11 }
  0xb1   :  { %289 = vst [vmem:[#allocation8 + $0x38] sm:$0xff] %v279_v14 }
  0xb2   :  { %300 = dma.vmem_to_hbm [thread:$0]  %s296_s2, 1024, %s298_s30, [#allocation4]  }
  0xb5   :  { %v267_v16 = vpop.f32.mrf.mxu2 }
  0xb6   :  { %v280_v17 = vpop.f32.mrf.mxu3 }
  0xb7   :  { %502 = dma.done.wait [#allocation4], 1024  }
  0xb8   :  { %503 = vsyncadd [#allocation4], 4294966272 }
  0xb9   :  { %305 = vsyncpa [#allocation3], 1 }
  0xba   :  { %306 = vsyncpa [#allocation6], 1 }
  0xbb   :  { %307 = vsyncpa [#allocation4], 1 }

</bundles_post_ra>
